<compile_context>
chip_gen: v5e
topology: v5e:2x2
jax: 0.10.0
libtpu: 0.0.40
codegen_flags: <defaults>
</compile_context>

<pallas_src>
import functools

import jax
import jax.numpy as jnp
from jax.experimental import pallas as pl
from jax.experimental.pallas import tpu as pltpu


# ----------------------------------------------------------------------------
# Fused kernel: both backbones + ensemble head for one batch block.
# ----------------------------------------------------------------------------
def fused_ensemble_kernel(patches_ref, convw_ref, convb_ref,
                          projw_ref, projb_ref, clsw_ref, clsb_ref,
                          o_ref, *, bt, hw):
    # patches_ref: (K_pad, BT*HW) bf16 -- shared im2col patches, lane-dense
    # convw_ref  : (2*Cmid, K_pad) bf16 -- backbone A rows stacked over B rows
    # convb_ref  : (2*Cmid, 1)     f32
    # projw_ref  : (2*Cmid, FA+FB) bf16 -- block-diagonal (A -> :FA, B -> FA:)
    # projb_ref  : (1, FA+FB)      f32
    # clsw_ref   : (FA+FB, Cpad)   bf16 -- classes zero-padded to 128 lanes
    # clsb_ref   : (1, Cpad)       f32
    # o_ref      : (BT, Cpad)      f32

    # Both backbones' 3x3 convs as ONE im2col matmul; accumulator lane-dense.
    acc = jnp.dot(convw_ref[...], patches_ref[...],
                  preferred_element_type=jnp.float32)            # (2C, BT*HW)
    acc = jnp.maximum(acc + convb_ref[...], 0.0)                 # bias + ReLU (f32 VPU)

    # Global average pool per image: static lane slices + XLU lane reductions
    # (replaces the old (BT*HW, BT) f32 averaging-matrix matmul operand).
    pooled = jnp.concatenate(
        [jnp.sum(acc[:, b * hw:(b + 1) * hw], axis=-1, keepdims=True)
         for b in range(bt)],
        axis=-1) * (1.0 / hw)                                    # (2C, BT) f32
    pooled_t = pooled.T                                          # (BT, 2C) tiny transpose

    # Block-diagonal projection -> concatenated [f1 | f2] in a single matmul.
    feats = jnp.dot(pooled_t.astype(projw_ref.dtype), projw_ref[...],
                    preferred_element_type=jnp.float32) + projb_ref[...]
    feats = jnp.maximum(feats, 0.0)                              # head ReLU (exact)

    # Ensemble classifier: one dot against the whole lane-dense weight.
    out = jnp.dot(feats.astype(clsw_ref.dtype), clsw_ref[...],
                  preferred_element_type=jnp.float32)
    o_ref[...] = out + clsb_ref[...]


# ----------------------------------------------------------------------------
# Wrapper: layout glue (NCHW->NHWC, bf16 cast, pad, im2col, weight packing)
# plus one pallas_call.
# ----------------------------------------------------------------------------
def _round_up(n, m):
    return ((n + m - 1) // m) * m


def _choose_batch_block(B, HW):
    """Returns (BT, padded_B): whole batch for small B; otherwise 8-aligned
    blocks of <= 64 rows giving >= 2 parallel grid blocks (v7x: both TCs),
    with B padded up to a block multiple (no unaligned remainder block)."""
    if B > 8:
        bt = min(64, _round_up((B + 1) // 2, 8))
        if (bt * HW) % 128 == 0:            # keep patch blocks lane-aligned
            return bt, _round_up(B, bt)
    return B, B


def resnet_ensemble_forward(x_nchw, params):
    # ---- wrapper-side layout glue ------------------------------------------
    x = jnp.transpose(x_nchw, (0, 2, 3, 1)).astype(jnp.bfloat16)  # bf16 BEFORE im2col
    B, H, W, Cin = x.shape
    HW = H * W
    K = 9 * Cin
    K_pad = _round_up(K, 32)

    BT, Bp = _choose_batch_block(B, HW)
    if Bp > B:
        x = jnp.pad(x, ((0, Bp - B), (0, 0), (0, 0), (0, 0)))
    n_blocks = Bp // BT

    # im2col with SAME padding, lane-dense layout:
    #   patches[(dy*3+dx)*Cin + c, b*HW + h*W + w] = x_pad[b, h+dy, w+dx, c]
    xp = jnp.pad(x, ((0, 0), (1, 1), (1, 1), (0, 0)))
    taps = [xp[:, dy:dy + H, dx:dx + W, :] for dy in range(3) for dx in range(3)]
    patches = jnp.stack(taps, axis=3)                              # (Bp,H,W,9,Cin) bf16
    patches = patches.reshape(Bp, HW, K).transpose(2, 0, 1).reshape(K, Bp * HW)
    patches = jnp.pad(patches, ((0, K_pad - K), (0, 0)))           # K aligned to 32

    # ---- pack both backbones + head into fused, padded weights --------------
    cmid = params["a_conv_w2d"].shape[0]
    fa = params["a_proj_w"].shape[-1]
    fb = params["b_proj_w"].shape[-1]
    classes = params["cls_b"].shape[-1]
    C_pad = _round_up(classes, 128)
    F = fa + fb

    conv_w = jnp.concatenate([params["a_conv_w2d"], params["b_conv_w2d"]], 0)
    conv_w = jnp.pad(conv_w, ((0, 0), (0, K_pad - K))).astype(jnp.bfloat16)
    conv_b = jnp.concatenate([params["a_conv_b"], params["b_conv_b"]], 0)   # (2C,1) f32
    proj_w = jnp.zeros((2 * cmid, F), jnp.bfloat16)                          # block-diag
    proj_w = proj_w.at[:cmid, :fa].set(params["a_proj_w"].astype(jnp.bfloat16))
    proj_w = proj_w.at[cmid:, fa:].set(params["b_proj_w"].astype(jnp.bfloat16))
    proj_b = jnp.concatenate([params["a_proj_b"], params["b_proj_b"]], 1)    # (1,F) f32
    # NOTE: classifier weight in bf16 (f32 accumulation) for the MXU; keep it
    # f32 if bit-level parity with an f32 reference is required.
    cls_w = jnp.pad(params["cls_w"].astype(jnp.bfloat16),
                    ((0, 0), (0, C_pad - classes)))
    cls_b = jnp.pad(params["cls_b"], ((0, 0), (0, C_pad - classes)))

    kern = functools.partial(fused_ensemble_kernel, bt=BT, hw=HW)
    const = lambda i: (0, 0)                                       # resident operands

    out = pl.pallas_call(
        kern,
        out_shape=jax.ShapeDtypeStruct((Bp, C_pad), jnp.float32),
        grid=(n_blocks,),
        in_specs=[
            pl.BlockSpec((K_pad, BT * HW), lambda i: (0, i)),      # im2col patches
            pl.BlockSpec((2 * cmid, K_pad), const),                # stacked conv w
            pl.BlockSpec((2 * cmid, 1), const),                    # stacked conv b
            pl.BlockSpec((2 * cmid, F), const),                    # block-diag proj w
            pl.BlockSpec((1, F), const),                           # proj b (concat)
            pl.BlockSpec((F, C_pad), const),                       # classifier w (padded)
            pl.BlockSpec((1, C_pad), const),                       # classifier b (padded)
        ],
        out_specs=pl.BlockSpec((BT, C_pad), lambda i: (i, 0)),
        compiler_params=pltpu.CompilerParams(
            dimension_semantics=("parallel",),                     # batch blocks -> both TCs
            vmem_limit_bytes=48 * 1024 * 1024),
    )(patches, conv_w, conv_b, proj_w, proj_b, cls_w, cls_b)

    return out[:B, :classes]


# ----------------------------------------------------------------------------
# Deterministic parameter construction (mirrors the module's __init__ intent).
# ----------------------------------------------------------------------------
def make_params(key, cin, cmid, fa, fb, classes):
    ks = jax.random.split(key, 10)
    k27 = 9 * cin

    def unif(k, shape, bound):
        return jax.random.uniform(k, shape, jnp.float32, -bound, bound)

    def xavier_conv_w2d(k):
        # nn.init.xavier_uniform_ on the 3x3 conv weight; stored pre-reshaped
        # to the im2col layout (Cmid, 9*Cin) matching k = (dy*3+dx)*Cin + c.
        fan_in, fan_out = cin * 9, cmid * 9
        limit = (6.0 / (fan_in + fan_out)) ** 0.5
        w_hwio = jax.random.uniform(k, (3, 3, cin, cmid), jnp.float32, -limit, limit)
        return w_hwio.reshape(k27, cmid).T

    conv_b_bound = 1.0 / (cin * 9) ** 0.5     # PyTorch Conv2d default bias init
    proj_bound = 1.0 / cmid ** 0.5            # nn.Linear default (in_features = cmid)
    cls_w_bound = 1.0 / (fa + fb) ** 0.5      # nn.Linear default weight init
    cls_b_bound = 1.0 / classes ** 0.5        # module: uniform(+/- 1/sqrt(classes))

    return {
        "a_conv_w2d": xavier_conv_w2d(ks[0]),
        "a_conv_b": unif(ks[1], (cmid, 1), conv_b_bound),
        "a_proj_w": unif(ks[2], (cmid, fa), proj_bound),
        "a_proj_b": unif(ks[3], (1, fa), proj_bound),
        "b_conv_w2d": xavier_conv_w2d(ks[4]),
        "b_conv_b": unif(ks[5], (cmid, 1), conv_b_bound),
        "b_proj_w": unif(ks[6], (cmid, fb), proj_bound),
        "b_proj_b": unif(ks[7], (1, fb), proj_bound),
        # classifier Linear(2048 + 512, classes); stored as (in, out) = W^T
        "cls_w": unif(ks[8], (fa + fb, classes), cls_w_bound),
        "cls_b": unif(ks[9], (1, classes), cls_b_bound),
    }


if __name__ == "__main__":
    B, Cin, H, W = 2, 3, 16, 16          # NCHW images, like the PyTorch module
    Cmid = 8                             # stand-in backbone conv width
    FA, FB = 2048, 512                   # ResNet-50 / ResNet-18 feature widths
    classes = 10

    key = jax.random.PRNGKey(0)
    k_params, k_x = jax.random.split(key)
    params = make_params(k_params, Cin, Cmid, FA, FB, classes)
    x = jax.random.normal(k_x, (B, Cin, H, W), jnp.float32)

    fwd = jax.jit(resnet_ensemble_forward)
    out = jax.block_until_ready(fwd(x, params))
    assert out.shape == (B, classes)
    assert out.dtype == jnp.float32
    assert bool(jnp.all(jnp.isfinite(out)))
    print("KERNEL_OK")
</pallas_src>

<mosaic_0001>
module attributes {stable_mosaic.version = 11 : i64} {
  func.func @fused_ensemble_kernel(%arg0: i32, %arg1: memref<32x512xbf16, #tpu.memory_space<vmem>>, %arg2: memref<16x32xbf16, #tpu.memory_space<vmem>>, %arg3: memref<16x1xf32, #tpu.memory_space<vmem>>, %arg4: memref<16x2560xbf16, #tpu.memory_space<vmem>>, %arg5: memref<1x2560xf32, #tpu.memory_space<vmem>>, %arg6: memref<2560x128xbf16, #tpu.memory_space<vmem>>, %arg7: memref<1x128xf32, #tpu.memory_space<vmem>>, %arg8: memref<2x128xf32, #tpu.memory_space<vmem>>) attributes {dimension_semantics = [#tpu.dimension_semantics<parallel>], iteration_bounds = array<i64: 1>, scalar_prefetch = 0 : i64, scratch_operands = 0 : i64, tpu.core_type = #tpu.core_type<tc>, window_params = [{transform_indices = @transform_0, window_bounds = array<i64: 32, 512>}, {pipeline_mode = #tpu.pipeline_mode<synchronous>, transform_indices = @transform_1, window_bounds = array<i64: 16, 32>}, {pipeline_mode = #tpu.pipeline_mode<synchronous>, transform_indices = @transform_2, window_bounds = array<i64: 16, 1>}, {pipeline_mode = #tpu.pipeline_mode<synchronous>, transform_indices = @transform_3, window_bounds = array<i64: 16, 2560>}, {pipeline_mode = #tpu.pipeline_mode<synchronous>, transform_indices = @transform_4, window_bounds = array<i64: 1, 2560>}, {pipeline_mode = #tpu.pipeline_mode<synchronous>, transform_indices = @transform_5, window_bounds = array<i64: 2560, 128>}, {pipeline_mode = #tpu.pipeline_mode<synchronous>, transform_indices = @transform_6, window_bounds = array<i64: 1, 128>}, {transform_indices = @transform_7, window_bounds = array<i64: 2, 128>}]} {
    %c0 = arith.constant 0 : index
    %c0_0 = arith.constant 0 : index
    %0 = vector.load %arg2[%c0, %c0_0] : memref<16x32xbf16, #tpu.memory_space<vmem>>, vector<16x32xbf16>
    %c0_1 = arith.constant 0 : index
    %c0_2 = arith.constant 0 : index
    %1 = vector.load %arg1[%c0_1, %c0_2] : memref<32x512xbf16, #tpu.memory_space<vmem>>, vector<32x512xbf16>
    %cst = arith.constant dense<0.000000e+00> : vector<16x512xf32>
    %2 = tpu.matmul %0, %1, %cst {dimension_numbers = #tpu.dot_dimension_numbers<[1], [0], [0], [1], [0, 0, 1, 1], [], []>} : vector<16x32xbf16>, vector<32x512xbf16>, vector<16x512xf32> -> vector<16x512xf32>
    %c0_3 = arith.constant 0 : index
    %c0_4 = arith.constant 0 : index
    %3 = vector.load %arg3[%c0_3, %c0_4] : memref<16x1xf32, #tpu.memory_space<vmem>>, vector<16x1xf32>
    %4 = vector.broadcast %3 : vector<16x1xf32> to vector<16x512xf32>
    %5 = arith.addf %2, %4 : vector<16x512xf32>
    %cst_5 = arith.constant 0.000000e+00 : f32
    %6 = vector.broadcast %cst_5 : f32 to vector<16x512xf32>
    %7 = arith.maximumf %5, %6 : vector<16x512xf32>
    %8 = vector.extract_strided_slice %7 {offsets = [0, 0], sizes = [16, 256], strides = [1, 1]} : vector<16x512xf32> to vector<16x256xf32>
    %cst_6 = arith.constant dense<0.000000e+00> : vector<16xf32>
    %9 = vector.multi_reduction <add>, %8, %cst_6 [1] : vector<16x256xf32> to vector<16xf32>
    %10 = vector.shape_cast %9 : vector<16xf32> to vector<16x1xf32>
    %11 = vector.extract_strided_slice %7 {offsets = [0, 256], sizes = [16, 256], strides = [1, 1]} : vector<16x512xf32> to vector<16x256xf32>
    %cst_7 = arith.constant dense<0.000000e+00> : vector<16xf32>
    %12 = vector.multi_reduction <add>, %11, %cst_7 [1] : vector<16x256xf32> to vector<16xf32>
    %13 = vector.shape_cast %12 : vector<16xf32> to vector<16x1xf32>
    %14 = tpu.concatenate %10, %13 in 1 : vector<16x1xf32>, vector<16x1xf32> -> vector<16x2xf32>
    %cst_8 = arith.constant 3.906250e-03 : f32
    %15 = vector.broadcast %cst_8 : f32 to vector<16x2xf32>
    %16 = arith.mulf %14, %15 : vector<16x2xf32>
    %17 = tpu.transpose %16, [1, 0] : vector<16x2xf32> -> vector<2x16xf32>
    %18 = arith.truncf %17 : vector<2x16xf32> to vector<2x16xbf16>
    %c0_9 = arith.constant 0 : index
    %c0_10 = arith.constant 0 : index
    %19 = vector.load %arg4[%c0_9, %c0_10] : memref<16x2560xbf16, #tpu.memory_space<vmem>>, vector<16x2560xbf16>
    %cst_11 = arith.constant dense<0.000000e+00> : vector<2x2560xf32>
    %20 = tpu.matmul %18, %19, %cst_11 {dimension_numbers = #tpu.dot_dimension_numbers<[1], [0], [0], [1], [0, 0, 1, 1], [], []>} : vector<2x16xbf16>, vector<16x2560xbf16>, vector<2x2560xf32> -> vector<2x2560xf32>
    %c0_12 = arith.constant 0 : index
    %c0_13 = arith.constant 0 : index
    %21 = vector.load %arg5[%c0_12, %c0_13] : memref<1x2560xf32, #tpu.memory_space<vmem>>, vector<1x2560xf32>
    %22 = vector.broadcast %21 : vector<1x2560xf32> to vector<2x2560xf32>
    %23 = arith.addf %20, %22 : vector<2x2560xf32>
    %cst_14 = arith.constant 0.000000e+00 : f32
    %24 = vector.broadcast %cst_14 : f32 to vector<2x2560xf32>
    %25 = arith.maximumf %23, %24 : vector<2x2560xf32>
    %26 = arith.truncf %25 : vector<2x2560xf32> to vector<2x2560xbf16>
    %c0_15 = arith.constant 0 : index
    %c0_16 = arith.constant 0 : index
    %27 = vector.load %arg6[%c0_15, %c0_16] : memref<2560x128xbf16, #tpu.memory_space<vmem>>, vector<2560x128xbf16>
    %cst_17 = arith.constant dense<0.000000e+00> : vector<2x128xf32>
    %28 = tpu.matmul %26, %27, %cst_17 {dimension_numbers = #tpu.dot_dimension_numbers<[1], [0], [0], [1], [0, 0, 1, 1], [], []>} : vector<2x2560xbf16>, vector<2560x128xbf16>, vector<2x128xf32> -> vector<2x128xf32>
    %c0_18 = arith.constant 0 : index
    %c0_19 = arith.constant 0 : index
    %29 = vector.load %arg7[%c0_18, %c0_19] : memref<1x128xf32, #tpu.memory_space<vmem>>, vector<1x128xf32>
    %30 = vector.broadcast %29 : vector<1x128xf32> to vector<2x128xf32>
    %31 = arith.addf %28, %30 : vector<2x128xf32>
    %c0_20 = arith.constant 0 : index
    %c0_21 = arith.constant 0 : index
    %32 = vector.load %arg8[%c0_20, %c0_21] : memref<2x128xf32, #tpu.memory_space<vmem>>, vector<2x128xf32>
    tpu.vector_store %arg8[%c0_20, %c0_21], %31 {strides = array<i32>} : memref<2x128xf32, #tpu.memory_space<vmem>>, vector<2x128xf32>,
    return
  }
  func.func @transform_0(%arg0: i32) -> (i32, i32) {
    %c0_i32 = arith.constant 0 : i32
    %c0_i32_0 = arith.constant 0 : i32
    return %c0_i32, %arg0 : i32, i32
  }
  func.func @transform_1(%arg0: i32) -> (i32, i32) {
    %c0_i32 = arith.constant 0 : i32
    %c0_i32_0 = arith.constant 0 : i32
    %c0_i32_1 = arith.constant 0 : i32
    return %c0_i32, %c0_i32_0 : i32, i32
  }
  func.func @transform_2(%arg0: i32) -> (i32, i32) {
    %c0_i32 = arith.constant 0 : i32
    %c0_i32_0 = arith.constant 0 : i32
    %c0_i32_1 = arith.constant 0 : i32
    return %c0_i32, %c0_i32_0 : i32, i32
  }
  func.func @transform_3(%arg0: i32) -> (i32, i32) {
    %c0_i32 = arith.constant 0 : i32
    %c0_i32_0 = arith.constant 0 : i32
    %c0_i32_1 = arith.constant 0 : i32
    return %c0_i32, %c0_i32_0 : i32, i32
  }
  func.func @transform_4(%arg0: i32) -> (i32, i32) {
    %c0_i32 = arith.constant 0 : i32
    %c0_i32_0 = arith.constant 0 : i32
    %c0_i32_1 = arith.constant 0 : i32
    return %c0_i32, %c0_i32_0 : i32, i32
  }
  func.func @transform_5(%arg0: i32) -> (i32, i32) {
    %c0_i32 = arith.constant 0 : i32
    %c0_i32_0 = arith.constant 0 : i32
    %c0_i32_1 = arith.constant 0 : i32
    return %c0_i32, %c0_i32_0 : i32, i32
  }
  func.func @transform_6(%arg0: i32) -> (i32, i32) {
    %c0_i32 = arith.constant 0 : i32
    %c0_i32_0 = arith.constant 0 : i32
    %c0_i32_1 = arith.constant 0 : i32
    return %c0_i32, %c0_i32_0 : i32, i32
  }
  func.func @transform_7(%arg0: i32) -> (i32, i32) {
    %c0_i32 = arith.constant 0 : i32
    %c0_i32_0 = arith.constant 0 : i32
    return %arg0, %c0_i32 : i32, i32
  }
}

</mosaic_0001>

<bundles_post_ra>
// kernel: resnet_ensemble_forward.1
= control target key start
LH: loop header
LB: loop body
LE: loop exit
PB: predicated region body
PF: predicated region fallthrough
CT: control target
= control target key end

     0   :  { %v3244_v26 = vmov 0   ;;  %s4032_s0 = inlined_call_operand.vmem [shape: bf16[32,512], index: 0, kind: input, shape index: {}]   ;;  %s4033_s1 = inlined_call_operand.vmem [shape: bf16[16,32], index: 1, kind: input, shape index: {}]   ;;  %s4034_s2 = inlined_call_operand.vmem [shape: f32[16,1], index: 2, kind: input, shape index: {}]   ;;  %s4035_s3 = inlined_call_operand.vmem [shape: bf16[16,2560], index: 3, kind: input, shape index: {}]   ;;  %s4036_s4 = inlined_call_operand.vmem [shape: f32[1,2560], index: 4, kind: input, shape index: {}]   ;;  %s4037_s5 = inlined_call_operand.vmem [shape: bf16[2560,128], index: 5, kind: input, shape index: {}]   ;;  %s4038_s6 = inlined_call_operand.vmem [shape: f32[1,128], index: 6, kind: input, shape index: {}]   ;;  %s4039_s7 = inlined_call_operand.hbm [shape: f32[2,128], index: 7, kind: output, shape index: {}]  }
   0x1   :  { %v2266_v0 = vld [vmem:[%s4032_s0 + $0x20] sm:$0xf]  ;;  %v3031_v1 = vld [vmem:[%s4032_s0 + $0x2c] sm:$0xf0]  ;;  %v3029_v2 = vld [vmem:[%s4032_s0 + $0x24] sm:$0xf]  ;;  %3216 = vset.pattern.permute.xlu0 %v3244_v26 }
   0x2   :  { %v2267_v3 = vor.u32 %v3031_v1, %v2266_v0  ;;  %v2268_v4 = vld [vmem:[%s4032_s0 + $0x30] sm:$0xf0]  ;;  %v2274_v5 = vld [vmem:[%s4032_s0 + $0x28] sm:$0xf]  ;;  %v3032_v6 = vld [vmem:[%s4032_s0 + $0x34] sm:$0xf0] }
   0x3   :  { %v2271_v7 = vor.u32 %v3029_v2, %v2268_v4  ;;  %v2275_v8 = vor.u32 %v3032_v6, %v2274_v5  ;;  %v3030_v9 = vld [vmem:[%s4032_s0 + $0x2c] sm:$0xf]  ;;  %v2276_v10 = vld [vmem:[%s4032_s0 + $0x38] sm:$0xf0]  ;;  %v2250_v11 = vld [vmem:[%s4032_s0] sm:$0xf] }
   0x4   :  { %105 = vmatpush.bf16.msra.mxu0 %v2267_v3  ;;  %v2279_v12 = vor.u32 %v3030_v9, %v2276_v10  ;;  %v3027_v13 = vld [vmem:[%s4032_s0 + $0xc] sm:$0xf0]  ;;  %v3025_v14 = vld [vmem:[%s4032_s0 + $0x4] sm:$0xf]  ;;  %v2252_v15 = vld [vmem:[%s4032_s0 + $0x10] sm:$0xf0] }
   0x5   :  { %119 = vmatpush.bf16.msra.mxu1 %v2271_v7  ;;  %133 = vmatpush.bf16.msra.mxu2 %v2275_v8  ;;  %v2251_v16 = vor.u32 %v3027_v13, %v2250_v11  ;;  %v2255_v17 = vor.u32 %v3025_v14, %v2252_v15  ;;  %v2258_v18 = vld [vmem:[%s4032_s0 + $0x8] sm:$0xf]  ;;  %v3028_v19 = vld [vmem:[%s4032_s0 + $0x14] sm:$0xf0]  ;;  %v3026_v20 = vld [vmem:[%s4032_s0 + $0xc] sm:$0xf] }
   0x6   :  { %147 = vmatpush.bf16.msra.mxu3 %v2279_v12  ;;  %v2259_v21 = vor.u32 %v3028_v19, %v2258_v18  ;;  %v2260_v22 = vld [vmem:[%s4032_s0 + $0x18] sm:$0xf0]  ;;  %v38_v23 = vld [vmem:[%s4034_s2] sm:$0xff] }
   0x7   :  { %v2263_v24 = vor.u32 %v3026_v20, %v2260_v22  ;;  %v3024_v25 = vld [vmem:[%s4033_s1] sm:$0xff] }
   0x8   :  { %12 = vsyncpa [#allocation3], 0  ;;  %106 = vmatpush.bf16.msra.mxu0 %v2251_v16  ;;  %vm95_vm0 = vcmask 261120   ;;  %42 = vperm.xlu0 %3216, %v38_v23   ;;  %v39_v27 = vld [vmem:[%s4034_s2 + $0x8] sm:$0xff]  ;;  %v2286_v58 = vld [vmem:[%s4035_s3] sm:$0xf] }
   0x9   :  { %120 = vmatpush.bf16.msra.mxu1 %v2255_v17  ;;  %134 = vmatpush.bf16.msra.mxu2 %v2259_v21  ;;  %v3043_v59 = vld [vmem:[%s4035_s3 + $0x4c] sm:$0xf0]  ;;  %v3033_v60 = vld [vmem:[%s4035_s3 + $0x4] sm:$0xf]  ;;  %v2288_v62 = vld [vmem:[%s4035_s3 + $0x50] sm:$0xf0] }
   0xa   :  { %148 = vmatpush.bf16.msra.mxu3 %v2263_v24  ;;  %v2287_v61 = vor.u32 %v3043_v59, %v2286_v58  ;;  %v2294_v63 = vld [vmem:[%s4035_s3 + $0x8] sm:$0xf]  ;;  %v3044_v0 = vld [vmem:[%s4035_s3 + $0x54] sm:$0xf0]  ;;  %v2291_v1 = vor.u32 %v3033_v60, %v2288_v62  ;;  %v3034_v3 = vld [vmem:[%s4035_s3 + $0xc] sm:$0xf] }
   0xb   :  { %2280 = vmatmul.msk.bf16.vlgmr.msra.gmra.mxu0 %vm95_vm0, %v3024_v25  ;;  %v2295_v2 = vor.u32 %v3044_v0, %v2294_v63  ;;  %v2296_v4 = vld [vmem:[%s4035_s3 + $0x58] sm:$0xf0]  ;;  %vm175_vm1 = vcmask 7168   ;;  %v2302_v14 = vld [vmem:[%s4035_s3 + $0x10] sm:$0xf]  ;;  %vm379_vm2 = vcmask 130048  }
   0xc   :  { %2281 = vmatmul.msk.bf16.vlgmr.msra.gmra.mxu1 %vm95_vm0, %v3024_v25  ;;  %2282 = vmatmul.msk.bf16.vlgmr.msra.gmra.mxu2 %vm95_vm0, %v3024_v25  ;;  %v2299_v5 = vor.u32 %v3034_v3, %v2296_v4  ;;  %v3045_v15 = vld [vmem:[%s4035_s3 + $0x5c] sm:$0xf0]  ;;  %v3035_v16 = vld [vmem:[%s4035_s3 + $0x14] sm:$0xf]  ;;  %v2304_v18 = vld [vmem:[%s4035_s3 + $0x60] sm:$0xf0] }
   0xd   :  { %2283 = vmatmul.msk.bf16.vlgmr.msra.gmra.mxu3 %vm95_vm0, %v3024_v25  ;;  %390 = vmatpush.bf16.msrb.mxu0 %v2287_v61  ;;  %v2303_v17 = vor.u32 %v3045_v15, %v2302_v14  ;;  %v2310_v19 = vld [vmem:[%s4035_s3 + $0x18] sm:$0xf]  ;;  %v3046_v20 = vld [vmem:[%s4035_s3 + $0x64] sm:$0xf0]  ;;  %v2307_v21 = vor.u32 %v3035_v16, %v2304_v18  ;;  %v3036_v23 = vld [vmem:[%s4035_s3 + $0x1c] sm:$0xf] }
   0xe   :  { %403 = vmatpush.bf16.msrb.mxu1 %v2291_v1  ;;  %416 = vmatpush.bf16.msrb.mxu2 %v2295_v2  ;;  %v2311_v22 = vor.u32 %v3046_v20, %v2310_v19  ;;  %v2312_v24 = vld [vmem:[%s4035_s3 + $0x68] sm:$0xf0]  ;;  %v2318_v26 = vld [vmem:[%s4035_s3 + $0x20] sm:$0xf]  ;;  %v2360_v59 = vld [vmem:[%s4035_s3 + $0x98] sm:$0xf0] }
   0xf   :  { %429 = vmatpush.bf16.msrb.mxu3 %v2299_v5  ;;  %v2315_v25 = vor.u32 %v3036_v23, %v2312_v24  ;;  %v3042_v58 = vld [vmem:[%s4035_s3 + $0x4c] sm:$0xf]  ;;  %v3060_v0 = vld [vmem:[%s4037_s5 + $0x38] sm:$0xff]  ;;  %v3059_v4 = vld [vmem:[%s4037_s5 + $0x30] sm:$0xff]  ;;  %s2235_s19 = sshll.u32 %s4039_s7, 4  ;;  %s2236_s19 = int_to_ptr.hbm [resolvable:$true] %s2235_s19 }
  0x10   :  { %47 = vperm.xlu0 %3216, %v39_v27   ;;  %v3047_v27 = vld [vmem:[%s4035_s3 + $0x6c] sm:$0xf0]  ;;  %v2363_v63 = vor.u32 %v3042_v58, %v2360_v59  ;;  %v3068_v1 = vld [vmem:[%s4037_s5 + $0x78] sm:$0xff]  ;;  %v3073_v14 = vld [vmem:[%s4037_s5 + $0xa0] sm:$0xff] }
  0x11   :  { %442 = vmatpush.bf16.msra.mxu0 %v2303_v17  ;;  %v3076_v2 = vld [vmem:[%s4037_s5 + $0xb8] sm:$0xff]  ;;  %v3067_v5 = vld [vmem:[%s4037_s5 + $0x70] sm:$0xff]  ;;  %v3081_v15 = vld [vmem:[%s4037_s5 + $0xe0] sm:$0xff] }
  0x12   :  { %455 = vmatpush.bf16.msra.mxu1 %v2307_v21  ;;  %468 = vmatpush.bf16.msra.mxu2 %v2311_v22  ;;  %v3084_v3 = vld [vmem:[%s4037_s5 + $0xf8] sm:$0xff]  ;;  %v3055_v20 = vld [vmem:[%s4037_s5 + $0x10] sm:$0xff]  ;;  %v3054_v24 = vld [vmem:[%s4037_s5 + $0x8] sm:$0xff] }
  0x13   :  { %481 = vmatpush.bf16.msra.mxu3 %v2315_v25  ;;  %v3056_v16 = vld [vmem:[%s4037_s5 + $0x18] sm:$0xff]  ;;  %v3063_v21 = vld [vmem:[%s4037_s5 + $0x50] sm:$0xff]  ;;  %v3062_v25 = vld [vmem:[%s4037_s5 + $0x48] sm:$0xff] }
  0x14   :  { %v3064_v17 = vld [vmem:[%s4037_s5 + $0x58] sm:$0xff]  ;;  %v3071_v22 = vld [vmem:[%s4037_s5 + $0x90] sm:$0xff]  ;;  %v3102_v58 = vld [vmem:[%s4037_s5 + $0x188] sm:$0xff] }
  0x15   :  { %v3072_v18 = vld [vmem:[%s4037_s5 + $0x98] sm:$0xff]  ;;  %v3079_v23 = vld [vmem:[%s4037_s5 + $0xd0] sm:$0xff]  ;;  %v3110_v59 = vld [vmem:[%s4037_s5 + $0x1c8] sm:$0xff] }
  0x16   :  { %v3080_v19 = vld [vmem:[%s4037_s5 + $0xd8] sm:$0xff] }
  0x7a   :  { %v43_v28 = vpop.permute.xlu0 %42 }
  0x82   :  { %v48_v36 = vpop.permute.xlu0 %47 }
  0x88   :  { %v108_v29 = vpop.f32.mrf.mxu0 }
  0x89   :  { %v109_v30 = vadd.f32 %v108_v29, %v43_v28  ;;  %v122_v31 = vpop.f32.mrf.mxu1  ;;  %v2320_v29 = vld [vmem:[%s4035_s3 + $0x70] sm:$0xf0] }
  0x8a   :  { %v123_v32 = vadd.f32 %v122_v31, %v43_v28  ;;  %v3048_v31 = vld [vmem:[%s4035_s3 + $0x74] sm:$0xf0] }
  0x8b   :  { %v155_v33 = vmax.f32 %v109_v30, 0.0  ;;  %v2326_v30 = vld [vmem:[%s4035_s3 + $0x28] sm:$0xf] }
  0x8c   :  { %v156_v34 = vmax.f32 %v123_v32, 0.0  ;;  %v3038_v32 = vld [vmem:[%s4035_s3 + $0x2c] sm:$0xf] }
  0x8e   :  { %v163_v35 = vadd.f32 %v156_v34, %v155_v33  ;;  %v2328_v33 = vld [vmem:[%s4035_s3 + $0x78] sm:$0xf0] }
  0x8f   :  { %v136_v37 = vpop.f32.mrf.mxu2 }
  0x90   :  { %v137_v38 = vadd.f32 %v136_v37, %v43_v28  ;;  %v150_v39 = vpop.f32.mrf.mxu3  ;;  %164 = vadd.xlane.f32.xlu1 %v163_v35  ;;  %v110_v40 = vpop.f32.mrf.mxu0 }
  0x91   :  { %v151_v41 = vadd.f32 %v150_v39, %v43_v28  ;;  %v111_v42 = vadd.f32 %v110_v40, %v48_v36  ;;  %v124_v43 = vpop.f32.mrf.mxu1  ;;  %v3037_v28 = vld [vmem:[%s4035_s3 + $0x24] sm:$0xf]  ;;  %v2331_v39 = vor.u32 %v3038_v32, %v2328_v33  ;;  %v2334_v40 = vld [vmem:[%s4035_s3 + $0x30] sm:$0xf] }
  0x92   :  { %v157_v44 = vmax.f32 %v137_v38, 0.0  ;;  %v125_v45 = vadd.f32 %v124_v43, %v48_v36  ;;  %v2323_v37 = vor.u32 %v3037_v28, %v2320_v29  ;;  %v2327_v38 = vor.u32 %v3048_v31, %v2326_v30  ;;  %v2336_v43 = vld [vmem:[%s4035_s3 + $0x80] sm:$0xf0]  ;;  %v3092_v30 = vld [vmem:[%s4037_s5 + $0x138] sm:$0xff] }
  0x93   :  { %v158_v46 = vmax.f32 %v151_v41, 0.0  ;;  %v159_v47 = vmax.f32 %v111_v42, 0.0  ;;  %v3049_v41 = vld [vmem:[%s4035_s3 + $0x7c] sm:$0xf0]  ;;  %v3039_v42 = vld [vmem:[%s4035_s3 + $0x34] sm:$0xf] }
  0x94   :  { %v160_v48 = vmax.f32 %v125_v45, 0.0  ;;  %v3050_v45 = vld [vmem:[%s4035_s3 + $0x84] sm:$0xf0]  ;;  %v3053_v28 = vld [vmem:[%s4037_s5] sm:$0xff]  ;;  %v3100_v31 = vld [vmem:[%s4037_s5 + $0x178] sm:$0xff] }
  0x95   :  { %v169_v50 = vadd.f32 %v158_v46, %v157_v44  ;;  %v2342_v44 = vld [vmem:[%s4035_s3 + $0x38] sm:$0xf]  ;;  %v3040_v46 = vld [vmem:[%s4035_s3 + $0x3c] sm:$0xf]  ;;  %v3061_v29 = vld [vmem:[%s4037_s5 + $0x40] sm:$0xff] }
  0x96   :  { %v166_v49 = vadd.f32 %v160_v48, %v159_v47  ;;  %v2344_v47 = vld [vmem:[%s4035_s3 + $0x88] sm:$0xf0]  ;;  %v2335_v48 = vor.u32 %v3049_v41, %v2334_v40  ;;  %v3069_v32 = vld [vmem:[%s4037_s5 + $0x80] sm:$0xff] }
  0x97   :  { %v138_v51 = vpop.f32.mrf.mxu2  ;;  %v3077_v33 = vld [vmem:[%s4037_s5 + $0xc0] sm:$0xff]  ;;  %v3090_v40 = vld [vmem:[%s4037_s5 + $0x128] sm:$0xff] }
  0x98   :  { %v139_v52 = vadd.f32 %v138_v51, %v48_v36  ;;  %v152_v53 = vpop.f32.mrf.mxu3  ;;  %167 = vadd.xlane.f32.xlu2 %v166_v49  ;;  %170 = vadd.xlane.f32.xlu1 %v169_v50  ;;  %v2339_v49 = vor.u32 %v3039_v42, %v2336_v43  ;;  %v2343_v50 = vor.u32 %v3050_v45, %v2342_v44  ;;  %v3098_v41 = vld [vmem:[%s4037_s5 + $0x168] sm:$0xff]  ;;  %v3089_v44 = vld [vmem:[%s4037_s5 + $0x120] sm:$0xff] }
  0x99   :  { %v153_v54 = vadd.f32 %v152_v53, %v48_v36  ;;  %v2319_v36 = vor.u32 %v3047_v27, %v2318_v26  ;;  %v2347_v51 = vor.u32 %v3040_v46, %v2344_v47  ;;  %v3051_v53 = vld [vmem:[%s4035_s3 + $0x8c] sm:$0xf0]  ;;  %v3070_v26 = vld [vmem:[%s4037_s5 + $0x88] sm:$0xff]  ;;  %v3097_v45 = vld [vmem:[%s4037_s5 + $0x160] sm:$0xff] }
  0x9a   :  { %v161_v55 = vmax.f32 %v139_v52, 0.0  ;;  %v2350_v52 = vld [vmem:[%s4035_s3 + $0x40] sm:$0xf]  ;;  %v3078_v27 = vld [vmem:[%s4037_s5 + $0xc8] sm:$0xff] }
  0x9b   :  { %v162_v56 = vmax.f32 %v153_v54, 0.0  ;;  %v3041_v54 = vld [vmem:[%s4035_s3 + $0x44] sm:$0xf]  ;;  %v2351_v60 = vor.u32 %v3051_v53, %v2350_v52  ;;  %v3106_v42 = vld [vmem:[%s4037_s5 + $0x1a8] sm:$0xff]  ;;  %v3087_v52 = vld [vmem:[%s4037_s5 + $0x110] sm:$0xff] }
  0x9c   :  { %v3114_v43 = vld [vmem:[%s4037_s5 + $0x1e8] sm:$0xff]  ;;  %v3105_v46 = vld [vmem:[%s4037_s5 + $0x1a0] sm:$0xff]  ;;  %v3095_v53 = vld [vmem:[%s4037_s5 + $0x150] sm:$0xff] }
  0x9d   :  { %v172_v57 = vadd.f32 %v162_v56, %v161_v55  ;;  %v2352_v55 = vld [vmem:[%s4035_s3 + $0x90] sm:$0xf0]  ;;  %v2358_v56 = vld [vmem:[%s4035_s3 + $0x48] sm:$0xf]  ;;  %v3113_v47 = vld [vmem:[%s4037_s5 + $0x1e0] sm:$0xff] }
  0x9e   :  { %v2355_v61 = vor.u32 %v3041_v54, %v2352_v55  ;;  %v3103_v54 = vld [vmem:[%s4037_s5 + $0x190] sm:$0xff] }
  0x9f   :  { %v3111_v55 = vld [vmem:[%s4037_s5 + $0x1d0] sm:$0xff] }
  0xa0   :  { %173 = vadd.xlane.f32.xlu2 %v172_v57  ;;  %v3052_v57 = vld [vmem:[%s4035_s3 + $0x94] sm:$0xf0] }
  0xa1   :  { %v2359_v62 = vor.u32 %v3052_v57, %v2358_v56  ;;  %v3086_v56 = vld [vmem:[%s4037_s5 + $0x108] sm:$0xff] }
  0xa2   :  { %v3094_v57 = vld [vmem:[%s4037_s5 + $0x148] sm:$0xff] }
 0x103   :  { %v165_v6 = vpop.xlane.xlu1 %164 }
 0x10b   :  { %v168_v7 = vpop.xlane.xlu2 %167  ;;  %v171_v8 = vpop.xlane.xlu1 %170 }
 0x10c   :  { %v176_v9 = vsel %vm175_vm1, %v165_v6, %v171_v8  ;;  %v3075_v6 = vld [vmem:[%s4037_s5 + $0xb0] sm:$0xff]  ;;  %v3058_v8 = vld [vmem:[%s4037_s5 + $0x28] sm:$0xff] }
 0x10d   :  { %v178_v10 = vmul.f32 0.00390625, %v176_v9  ;;  %v3066_v9 = vld [vmem:[%s4037_s5 + $0x68] sm:$0xff] }
 0x10f   :  { %180 = vxpose.xlu0.b32.start [1/2] (short) (narrow) %v178_v10, 8  ;;  %v3074_v10 = vld [vmem:[%s4037_s5 + $0xa8] sm:$0xff] }
 0x113   :  { %v174_v11 = vpop.xlane.xlu2 %173 }
 0x114   :  { %v177_v12 = vsel %vm175_vm1, %v168_v7, %v174_v11  ;;  %v3083_v7 = vld [vmem:[%s4037_s5 + $0xf0] sm:$0xff]  ;;  %v3082_v11 = vld [vmem:[%s4037_s5 + $0xe8] sm:$0xff] }
 0x115   :  { %v179_v13 = vmul.f32 0.00390625, %v177_v12  ;;  %v3057_v12 = vld [vmem:[%s4037_s5 + $0x20] sm:$0xff] }
 0x117   :  { %181 = vxpose.xlu0.b32.end [2/2] (short) (narrow) %v179_v13, 8  ;;  %v3065_v13 = vld [vmem:[%s4037_s5 + $0x60] sm:$0xff] }
 0x1b3   :  { %v196_v34 = vpop.trf.xlu0 }
 0x1b4   :  { %v3415_v35 = vpack.c.bf16 %v196_v34, %v196_v34  ;;  %v3108_v34 = vld [vmem:[%s4037_s5 + $0x1b8] sm:$0xff] }
 0x1b6   :  { %2364 = vmatmul.msk.bf16.vlgmr.msrb.gmra.mxu0 %vm379_vm2, %v3415_v35  ;;  %2365 = vmatmul.msk.bf16.vlgmr.msrb.gmra.mxu1 %vm379_vm2, %v3415_v35 }
 0x1b7   :  { %2366 = vmatmul.msk.bf16.vlgmr.msrb.gmra.mxu2 %vm379_vm2, %v3415_v35  ;;  %2367 = vmatmul.msk.bf16.vlgmr.msrb.gmra.mxu3 %vm379_vm2, %v3415_v35 }
 0x1b8   :  { %494 = vmatpush.bf16.msrb.mxu0 %v2319_v36  ;;  %507 = vmatpush.bf16.msrb.mxu1 %v2323_v37  ;;  %v3091_v36 = vld [vmem:[%s4037_s5 + $0x130] sm:$0xff] }
 0x1b9   :  { %520 = vmatpush.bf16.msrb.mxu2 %v2327_v38  ;;  %533 = vmatpush.bf16.msrb.mxu3 %v2331_v39  ;;  %v3099_v37 = vld [vmem:[%s4037_s5 + $0x170] sm:$0xff] }
 0x1ba   :  { %v3107_v38 = vld [vmem:[%s4037_s5 + $0x1b0] sm:$0xff] }
 0x1bb   :  { %v3115_v39 = vld [vmem:[%s4037_s5 + $0x1f0] sm:$0xff] }
 0x1c6   :  { %2368 = vmatmul.msk.bf16.vlgmr.msra.gmra.mxu0 %vm379_vm2, %v3415_v35  ;;  %2369 = vmatmul.msk.bf16.vlgmr.msra.gmra.mxu1 %vm379_vm2, %v3415_v35 }
 0x1c7   :  { %2370 = vmatmul.msk.bf16.vlgmr.msra.gmra.mxu2 %vm379_vm2, %v3415_v35  ;;  %2371 = vmatmul.msk.bf16.vlgmr.msra.gmra.mxu3 %vm379_vm2, %v3415_v35 }
 0x1c8   :  { %546 = vmatpush.bf16.msra.mxu0 %v2335_v48  ;;  %559 = vmatpush.bf16.msra.mxu1 %v2339_v49  ;;  %v3088_v48 = vld [vmem:[%s4037_s5 + $0x118] sm:$0xff] }
 0x1c9   :  { %572 = vmatpush.bf16.msra.mxu2 %v2343_v50  ;;  %585 = vmatpush.bf16.msra.mxu3 %v2347_v51  ;;  %v3096_v49 = vld [vmem:[%s4037_s5 + $0x158] sm:$0xff] }
 0x1ca   :  { %v3104_v50 = vld [vmem:[%s4037_s5 + $0x198] sm:$0xff] }
 0x1cb   :  { %v3112_v51 = vld [vmem:[%s4037_s5 + $0x1d8] sm:$0xff] }
 0x1d6   :  { %2372 = vmatmul.msk.bf16.vlgmr.msrb.gmra.mxu0 %vm379_vm2, %v3415_v35  ;;  %2373 = vmatmul.msk.bf16.vlgmr.msrb.gmra.mxu1 %vm379_vm2, %v3415_v35 }
 0x1d7   :  { %2374 = vmatmul.msk.bf16.vlgmr.msrb.gmra.mxu2 %vm379_vm2, %v3415_v35  ;;  %2375 = vmatmul.msk.bf16.vlgmr.msrb.gmra.mxu3 %vm379_vm2, %v3415_v35 }
 0x1d8   :  { %598 = vmatpush.bf16.msrb.mxu0 %v2351_v60  ;;  %611 = vmatpush.bf16.msrb.mxu1 %v2355_v61  ;;  %v3085_v60 = vld [vmem:[%s4037_s5 + $0x100] sm:$0xff] }
 0x1d9   :  { %624 = vmatpush.bf16.msrb.mxu2 %v2359_v62  ;;  %637 = vmatpush.bf16.msrb.mxu3 %v2363_v63  ;;  %v3093_v61 = vld [vmem:[%s4037_s5 + $0x140] sm:$0xff] }
 0x1da   :  { %v3101_v62 = vld [vmem:[%s4037_s5 + $0x180] sm:$0xff] }
 0x1db   :  { %v3109_v63 = vld [vmem:[%s4037_s5 + $0x1c0] sm:$0xff] }
 0x1e6   :  { %2376 = vmatmul.msk.bf16.vlgmr.msra.gmra.mxu0 %vm379_vm2, %v3415_v35  ;;  %2377 = vmatmul.msk.bf16.vlgmr.msra.gmra.mxu1 %vm379_vm2, %v3415_v35 }
 0x1e7   :  { %2378 = vmatmul.msk.bf16.vlgmr.msra.gmra.mxu2 %vm379_vm2, %v3415_v35  ;;  %2379 = vmatmul.msk.bf16.vlgmr.msra.gmra.mxu3 %vm379_vm2, %v3415_v35 }
 0x1e8   :  { %1967 = vmatpush.bf16.msra.mxu0 %v3060_v0  ;;  %1980 = vmatpush.bf16.msra.mxu1 %v3068_v1  ;;  %v3700_v0 = vld [vmem:[%s4036_s4] sm:$0xff] }
 0x1e9   :  { %1993 = vmatpush.bf16.msra.mxu2 %v3076_v2  ;;  %2006 = vmatpush.bf16.msra.mxu3 %v3084_v3  ;;  %v239_v1 = vperm.slane %v3700_v0, 0  ;;  %v240_v2 = vperm.slane %v3700_v0, 1 }
 0x1ec   :  { %1968 = vmatpush.bf16.msra.mxu0 %v3059_v4  ;;  %1981 = vmatpush.bf16.msra.mxu1 %v3067_v5 }
 0x1ed   :  { %1994 = vmatpush.bf16.msra.mxu2 %v3075_v6  ;;  %2007 = vmatpush.bf16.msra.mxu3 %v3083_v7 }
 0x1f0   :  { %1969 = vmatpush.bf16.msra.mxu0 %v3058_v8  ;;  %1982 = vmatpush.bf16.msra.mxu1 %v3066_v9  ;;  %v241_v9 = vperm.slane %v3700_v0, 2 }
 0x1f1   :  { %1995 = vmatpush.bf16.msra.mxu2 %v3074_v10  ;;  %2008 = vmatpush.bf16.msra.mxu3 %v3082_v11  ;;  %v242_v10 = vperm.slane %v3700_v0, 3  ;;  %v3124_v11 = vld [vmem:[%s4037_s5 + $0x238] sm:$0xff] }
 0x1f4   :  { %1970 = vmatpush.bf16.msra.mxu0 %v3057_v12  ;;  %1983 = vmatpush.bf16.msra.mxu1 %v3065_v13  ;;  %v3132_v12 = vld [vmem:[%s4037_s5 + $0x278] sm:$0xff] }
 0x1f5   :  { %1996 = vmatpush.bf16.msra.mxu2 %v3073_v14  ;;  %2009 = vmatpush.bf16.msra.mxu3 %v3081_v15 }
 0x1f6   :  { %2380 = vmatmul.msk.bf16.vlgmr.msrb.gmra.mxu0 %vm379_vm2, %v3415_v35  ;;  %2381 = vmatmul.msk.bf16.vlgmr.msrb.gmra.mxu1 %vm379_vm2, %v3415_v35 }
 0x1f7   :  { %2382 = vmatmul.msk.bf16.vlgmr.msrb.gmra.mxu2 %vm379_vm2, %v3415_v35  ;;  %2383 = vmatmul.msk.bf16.vlgmr.msrb.gmra.mxu3 %vm379_vm2, %v3415_v35  ;;  %v3116_v35 = vld [vmem:[%s4037_s5 + $0x1f8] sm:$0xff] }
 0x1f8   :  { %1971 = vmatpush.bf16.msra.mxu0 %v3056_v16  ;;  %1984 = vmatpush.bf16.msra.mxu1 %v3064_v17 }
 0x1f9   :  { %1997 = vmatpush.bf16.msra.mxu2 %v3072_v18  ;;  %2010 = vmatpush.bf16.msra.mxu3 %v3080_v19 }
 0x1fc   :  { %1972 = vmatpush.bf16.msra.mxu0 %v3055_v20  ;;  %1985 = vmatpush.bf16.msra.mxu1 %v3063_v21  ;;  %v3123_v21 = vld [vmem:[%s4037_s5 + $0x230] sm:$0xff] }
 0x1fd   :  { %1998 = vmatpush.bf16.msra.mxu2 %v3071_v22  ;;  %2011 = vmatpush.bf16.msra.mxu3 %v3079_v23  ;;  %v3131_v22 = vld [vmem:[%s4037_s5 + $0x270] sm:$0xff] }
 0x200   :  { %1973 = vmatpush.bf16.msra.mxu0 %v3054_v24  ;;  %1986 = vmatpush.bf16.msra.mxu1 %v3062_v25  ;;  %v3140_v25 = vld [vmem:[%s4037_s5 + $0x2b8] sm:$0xff] }
 0x201   :  { %1999 = vmatpush.bf16.msra.mxu2 %v3070_v26  ;;  %2012 = vmatpush.bf16.msra.mxu3 %v3078_v27  ;;  %v3148_v26 = vld [vmem:[%s4037_s5 + $0x2f8] sm:$0xff] }
 0x204   :  { %1974 = vmatpush.bf16.msra.mxu0 %v3053_v28  ;;  %1987 = vmatpush.bf16.msra.mxu1 %v3061_v29  ;;  %v3122_v29 = vld [vmem:[%s4037_s5 + $0x228] sm:$0xff] }
 0x205   :  { %2000 = vmatpush.bf16.msra.mxu2 %v3069_v32  ;;  %2013 = vmatpush.bf16.msra.mxu3 %v3077_v33  ;;  %v244_v32 = vperm.slane %v3700_v0, 5 }
 0x208   :  { %2019 = vmatpush.bf16.msrb.mxu0 %v3092_v30  ;;  %2032 = vmatpush.bf16.msrb.mxu1 %v3100_v31  ;;  %v3130_v30 = vld [vmem:[%s4037_s5 + $0x268] sm:$0xff]  ;;  %v243_v31 = vperm.slane %v3700_v0, 4 }
 0x209   :  { %2045 = vmatpush.bf16.msrb.mxu2 %v3108_v34  ;;  %2058 = vmatpush.bf16.msrb.mxu3 %v3116_v35  ;;  %v3139_v35 = vld [vmem:[%s4037_s5 + $0x2b0] sm:$0xff] }
 0x20c   :  { %2020 = vmatpush.bf16.msrb.mxu0 %v3091_v36  ;;  %2033 = vmatpush.bf16.msrb.mxu1 %v3099_v37  ;;  %v3147_v36 = vld [vmem:[%s4037_s5 + $0x2f0] sm:$0xff] }
 0x20d   :  { %2046 = vmatpush.bf16.msrb.mxu2 %v3107_v38  ;;  %2059 = vmatpush.bf16.msrb.mxu3 %v3115_v39  ;;  %v3121_v39 = vld [vmem:[%s4037_s5 + $0x220] sm:$0xff] }
 0x210   :  { %2021 = vmatpush.bf16.msrb.mxu0 %v3090_v40  ;;  %2034 = vmatpush.bf16.msrb.mxu1 %v3098_v41  ;;  %v3129_v40 = vld [vmem:[%s4037_s5 + $0x260] sm:$0xff] }
 0x211   :  { %2047 = vmatpush.bf16.msrb.mxu2 %v3106_v42  ;;  %2060 = vmatpush.bf16.msrb.mxu3 %v3114_v43 }
 0x214   :  { %2022 = vmatpush.bf16.msrb.mxu0 %v3089_v44  ;;  %2035 = vmatpush.bf16.msrb.mxu1 %v3097_v45  ;;  %v3138_v45 = vld [vmem:[%s4037_s5 + $0x2a8] sm:$0xff] }
 0x215   :  { %2048 = vmatpush.bf16.msrb.mxu2 %v3105_v46  ;;  %2061 = vmatpush.bf16.msrb.mxu3 %v3113_v47  ;;  %v3146_v46 = vld [vmem:[%s4037_s5 + $0x2e8] sm:$0xff]  ;;  %v245_v47 = vperm.slane %v3700_v0, 6 }
 0x218   :  { %2023 = vmatpush.bf16.msrb.mxu0 %v3088_v48  ;;  %2036 = vmatpush.bf16.msrb.mxu1 %v3096_v49  ;;  %v246_v48 = vperm.slane %v3700_v0, 7 }
 0x219   :  { %2049 = vmatpush.bf16.msrb.mxu2 %v3104_v50  ;;  %2062 = vmatpush.bf16.msrb.mxu3 %v3112_v51  ;;  %v3120_v51 = vld [vmem:[%s4037_s5 + $0x218] sm:$0xff] }
 0x21c   :  { %2024 = vmatpush.bf16.msrb.mxu0 %v3087_v52  ;;  %2037 = vmatpush.bf16.msrb.mxu1 %v3095_v53  ;;  %v3128_v52 = vld [vmem:[%s4037_s5 + $0x258] sm:$0xff] }
 0x21d   :  { %2050 = vmatpush.bf16.msrb.mxu2 %v3103_v54  ;;  %2063 = vmatpush.bf16.msrb.mxu3 %v3111_v55  ;;  %v3137_v55 = vld [vmem:[%s4037_s5 + $0x2a0] sm:$0xff] }
 0x220   :  { %2025 = vmatpush.bf16.msrb.mxu0 %v3086_v56  ;;  %2038 = vmatpush.bf16.msrb.mxu1 %v3094_v57  ;;  %v3145_v56 = vld [vmem:[%s4037_s5 + $0x2e0] sm:$0xff] }
 0x221   :  { %2051 = vmatpush.bf16.msrb.mxu2 %v3102_v58  ;;  %2064 = vmatpush.bf16.msrb.mxu3 %v3110_v59 }
 0x224   :  { %2026 = vmatpush.bf16.msrb.mxu0 %v3085_v60  ;;  %2039 = vmatpush.bf16.msrb.mxu1 %v3093_v61  ;;  %v3119_v61 = vld [vmem:[%s4037_s5 + $0x210] sm:$0xff] }
 0x225   :  { %2052 = vmatpush.bf16.msrb.mxu2 %v3101_v62  ;;  %2065 = vmatpush.bf16.msrb.mxu3 %v3109_v63  ;;  %v3127_v62 = vld [vmem:[%s4037_s5 + $0x250] sm:$0xff] }
 0x233   :  { %v392_v3 = vpop.f32.mrf.mxu0  ;;  %v405_v4 = vpop.f32.mrf.mxu1 }
 0x234   :  { %v393_v5 = vadd.f32 %v392_v3, %v239_v1  ;;  %v406_v6 = vadd.f32 %v405_v4, %v240_v2  ;;  %v3773_v1 = vld [vmem:[%s4036_s4 + $0x8] sm:$0xff]  ;;  %v3136_v2 = vld [vmem:[%s4037_s5 + $0x298] sm:$0xff] }
 0x235   :  { %v3144_v3 = vld [vmem:[%s4037_s5 + $0x2d8] sm:$0xff] }
 0x236   :  { %v643_v7 = vmax.f32 %v393_v5, 0.0  ;;  %v644_v8 = vmax.f32 %v406_v6, 0.0  ;;  %v3118_v6 = vld [vmem:[%s4037_s5 + $0x208] sm:$0xff] }
 0x238   :  { %v663_v13 = vpack.c.bf16 %v643_v7, %v643_v7  ;;  %v664_v14 = vpack.c.bf16 %v644_v8, %v644_v8  ;;  %v3126_v7 = vld [vmem:[%s4037_s5 + $0x248] sm:$0xff]  ;;  %v247_v8 = vperm.slane %v3773_v1, 0 }
 0x23a   :  { %v418_v15 = vpop.f32.mrf.mxu2  ;;  %v431_v16 = vpop.f32.mrf.mxu3  ;;  %1975 = vmatmul.bf16.vlgmr.msra.gmra.mxu0 %v663_v13  ;;  %1988 = vmatmul.bf16.vlgmr.msra.gmra.mxu1 %v664_v14  ;;  %v3143_v13 = vld [vmem:[%s4037_s5 + $0x2d0] sm:$0xff] }
 0x23b   :  { %v419_v17 = vadd.f32 %v418_v15, %v241_v9  ;;  %v432_v18 = vadd.f32 %v431_v16, %v242_v10  ;;  %2071 = vmatpush.bf16.msra.mxu0 %v3124_v11  ;;  %2084 = vmatpush.bf16.msra.mxu1 %v3132_v12  ;;  %v394_v19 = vpop.f32.mrf.mxu0  ;;  %v407_v20 = vpop.f32.mrf.mxu1  ;;  %v248_v9 = vperm.slane %v3773_v1, 1  ;;  %v3135_v12 = vld [vmem:[%s4037_s5 + $0x290] sm:$0xff] }
 0x23c   :  { %v3125_v19 = vld [vmem:[%s4037_s5 + $0x240] sm:$0xff]  ;;  %v3156_v20 = vld [vmem:[%s4037_s5 + $0x338] sm:$0xff] }
 0x23d   :  { %v645_v23 = vmax.f32 %v419_v17, 0.0  ;;  %v646_v24 = vmax.f32 %v432_v18, 0.0  ;;  %v3117_v18 = vld [vmem:[%s4037_s5 + $0x200] sm:$0xff] }
 0x23f   :  { %v665_v27 = vpack.c.bf16 %v645_v23, %v645_v23  ;;  %v666_v28 = vpack.c.bf16 %v646_v24, %v646_v24  ;;  %2072 = vmatpush.bf16.msra.mxu0 %v3123_v21  ;;  %2085 = vmatpush.bf16.msra.mxu1 %v3131_v22  ;;  %v3164_v21 = vld [vmem:[%s4037_s5 + $0x378] sm:$0xff]  ;;  %v3134_v24 = vld [vmem:[%s4037_s5 + $0x288] sm:$0xff] }
 0x241   :  { %2001 = vmatmul.bf16.vlgmr.msra.gmra.mxu2 %v665_v27  ;;  %2014 = vmatmul.bf16.vlgmr.msra.gmra.mxu3 %v666_v28  ;;  %v250_v27 = vperm.slane %v3773_v1, 3 }
 0x242   :  { %2097 = vmatpush.bf16.msra.mxu2 %v3140_v25  ;;  %2110 = vmatpush.bf16.msra.mxu3 %v3148_v26  ;;  %v420_v33 = vpop.f32.mrf.mxu2  ;;  %v433_v34 = vpop.f32.mrf.mxu3  ;;  %v3142_v25 = vld [vmem:[%s4037_s5 + $0x2c8] sm:$0xff]  ;;  %v249_v26 = vperm.slane %v3773_v1, 2 }
 0x243   :  { %2073 = vmatpush.bf16.msra.mxu0 %v3122_v29  ;;  %2086 = vmatpush.bf16.msra.mxu1 %v3130_v30  ;;  %v444_v37 = vpop.f32.mrf.mxu0  ;;  %v457_v38 = vpop.f32.mrf.mxu1  ;;  %v3155_v30 = vld [vmem:[%s4037_s5 + $0x330] sm:$0xff]  ;;  %v3133_v34 = vld [vmem:[%s4037_s5 + $0x280] sm:$0xff] }
 0x244   :  { %v445_v41 = vadd.f32 %v444_v37, %v243_v31  ;;  %v458_v42 = vadd.f32 %v457_v38, %v244_v32  ;;  %v3163_v31 = vld [vmem:[%s4037_s5 + $0x370] sm:$0xff] }
 0x246   :  { %v647_v43 = vmax.f32 %v445_v41, 0.0  ;;  %v648_v44 = vmax.f32 %v458_v42, 0.0  ;;  %2098 = vmatpush.bf16.msra.mxu2 %v3139_v35  ;;  %2111 = vmatpush.bf16.msra.mxu3 %v3147_v36  ;;  %v3141_v35 = vld [vmem:[%s4037_s5 + $0x2c0] sm:$0xff]  ;;  %v3180_v41 = vld [vmem:[%s4037_s5 + $0x3f8] sm:$0xff] }
 0x247   :  { %2074 = vmatpush.bf16.msra.mxu0 %v3121_v39  ;;  %2087 = vmatpush.bf16.msra.mxu1 %v3129_v40  ;;  %v3172_v40 = vld [vmem:[%s4037_s5 + $0x3b8] sm:$0xff] }
 0x248   :  { %v667_v49 = vpack.c.bf16 %v647_v43, %v647_v43  ;;  %v668_v50 = vpack.c.bf16 %v648_v44, %v648_v44  ;;  %v3154_v44 = vld [vmem:[%s4037_s5 + $0x328] sm:$0xff] }
 0x24a   :  { %2099 = vmatpush.bf16.msra.mxu2 %v3138_v45  ;;  %2112 = vmatpush.bf16.msra.mxu3 %v3146_v46  ;;  %v470_v53 = vpop.f32.mrf.mxu2  ;;  %v483_v54 = vpop.f32.mrf.mxu3  ;;  %v3162_v45 = vld [vmem:[%s4037_s5 + $0x368] sm:$0xff] }
 0x24b   :  { %v471_v57 = vadd.f32 %v470_v53, %v245_v47  ;;  %v484_v58 = vadd.f32 %v483_v54, %v246_v48  ;;  %2027 = vmatmul.bf16.vlgmr.msrb.gmra.mxu0 %v667_v49  ;;  %2040 = vmatmul.bf16.vlgmr.msrb.gmra.mxu1 %v668_v50  ;;  %v446_v59 = vpop.f32.mrf.mxu0  ;;  %v459_v60 = vpop.f32.mrf.mxu1  ;;  %v3171_v48 = vld [vmem:[%s4037_s5 + $0x3b0] sm:$0xff]  ;;  %v3153_v50 = vld [vmem:[%s4037_s5 + $0x320] sm:$0xff] }
 0x24c   :  { %2075 = vmatpush.bf16.msra.mxu0 %v3120_v51  ;;  %2088 = vmatpush.bf16.msra.mxu1 %v3128_v52  ;;  %v3179_v49 = vld [vmem:[%s4037_s5 + $0x3f0] sm:$0xff]  ;;  %v3161_v51 = vld [vmem:[%s4037_s5 + $0x360] sm:$0xff]  ;;  %v3160_v59 = vld [vmem:[%s4037_s5 + $0x358] sm:$0xff] }
 0x24d   :  { %v649_v63 = vmax.f32 %v471_v57, 0.0  ;;  %v650_v0 = vmax.f32 %v484_v58, 0.0  ;;  %v3178_v57 = vld [vmem:[%s4037_s5 + $0x3e8] sm:$0xff]  ;;  %v3152_v58 = vld [vmem:[%s4037_s5 + $0x318] sm:$0xff]  ;;  %v3169_v60 = vld [vmem:[%s4037_s5 + $0x3a0] sm:$0xff] }
 0x24e   :  { %2100 = vmatpush.bf16.msra.mxu2 %v3137_v55  ;;  %2113 = vmatpush.bf16.msra.mxu3 %v3145_v56  ;;  %v3170_v56 = vld [vmem:[%s4037_s5 + $0x3a8] sm:$0xff] }
 0x24f   :  { %v669_v4 = vpack.c.bf16 %v649_v63, %v649_v63  ;;  %v670_v5 = vpack.c.bf16 %v650_v0, %v650_v0  ;;  %v3159_v63 = vld [vmem:[%s4037_s5 + $0x350] sm:$0xff]  ;;  %v251_v0 = vperm.slane %v3773_v1, 4 }
 0x250   :  { %2076 = vmatpush.bf16.msra.mxu0 %v3119_v61  ;;  %2089 = vmatpush.bf16.msra.mxu1 %v3127_v62  ;;  %v3177_v61 = vld [vmem:[%s4037_s5 + $0x3e0] sm:$0xff]  ;;  %v3151_v62 = vld [vmem:[%s4037_s5 + $0x310] sm:$0xff] }
 0x251   :  { %2053 = vmatmul.bf16.vlgmr.msrb.gmra.mxu2 %v669_v4  ;;  %2066 = vmatmul.bf16.vlgmr.msrb.gmra.mxu3 %v670_v5 }
 0x252   :  { %2101 = vmatpush.bf16.msra.mxu2 %v3136_v2  ;;  %2114 = vmatpush.bf16.msra.mxu3 %v3144_v3  ;;  %v472_v10 = vpop.f32.mrf.mxu2  ;;  %v485_v11 = vpop.f32.mrf.mxu3  ;;  %v252_v2 = vperm.slane %v3773_v1, 5 }
 0x253   :  { %v496_v14 = vpop.f32.mrf.mxu0  ;;  %v509_v15 = vpop.f32.mrf.mxu1  ;;  %v3158_v10 = vld [vmem:[%s4037_s5 + $0x348] sm:$0xff] }
 0x254   :  { %2077 = vmatpush.bf16.msra.mxu0 %v3118_v6  ;;  %2090 = vmatpush.bf16.msra.mxu1 %v3126_v7  ;;  %v497_v16 = vadd.f32 %v496_v14, %v247_v8  ;;  %v510_v17 = vadd.f32 %v509_v15, %v248_v9  ;;  %v3168_v7 = vld [vmem:[%s4037_s5 + $0x398] sm:$0xff]  ;;  %v3150_v9 = vld [vmem:[%s4037_s5 + $0x308] sm:$0xff]  ;;  %v3175_v14 = vld [vmem:[%s4037_s5 + $0x3d0] sm:$0xff]  ;;  %v253_v15 = vperm.slane %v3773_v1, 6 }
 0x255   :  { %v3176_v8 = vld [vmem:[%s4037_s5 + $0x3d8] sm:$0xff] }
 0x256   :  { %v651_v22 = vmax.f32 %v497_v16, 0.0  ;;  %v652_v23 = vmax.f32 %v510_v17, 0.0  ;;  %2102 = vmatpush.bf16.msra.mxu2 %v3135_v12  ;;  %2115 = vmatpush.bf16.msra.mxu3 %v3143_v13  ;;  %v3167_v13 = vld [vmem:[%s4037_s5 + $0x390] sm:$0xff]  ;;  %v254_v16 = vperm.slane %v3773_v1, 7  ;;  %v3149_v17 = vld [vmem:[%s4037_s5 + $0x300] sm:$0xff]  ;;  %v3196_v1 = vld [vmem:[%s4037_s5 + $0x478] sm:$0xff] }
 0x258   :  { %v671_v28 = vpack.c.bf16 %v651_v22, %v651_v22  ;;  %v672_v29 = vpack.c.bf16 %v652_v23, %v652_v23  ;;  %2078 = vmatpush.bf16.msra.mxu0 %v3117_v18  ;;  %2091 = vmatpush.bf16.msra.mxu1 %v3125_v19  ;;  %v3157_v18 = vld [vmem:[%s4037_s5 + $0x340] sm:$0xff]  ;;  %v3188_v23 = vld [vmem:[%s4037_s5 + $0x438] sm:$0xff] }
 0x25a   :  { %2103 = vmatpush.bf16.msra.mxu2 %v3134_v24  ;;  %2116 = vmatpush.bf16.msra.mxu3 %v3142_v25  ;;  %v522_v32 = vpop.f32.mrf.mxu2  ;;  %v535_v33 = vpop.f32.mrf.mxu3 }
 0x25b   :  { %v523_v36 = vadd.f32 %v522_v32, %v249_v26  ;;  %v536_v37 = vadd.f32 %v535_v33, %v250_v27  ;;  %2079 = vmatmul.bf16.vlgmr.msra.gmra.mxu0 %v671_v28  ;;  %2092 = vmatmul.bf16.vlgmr.msra.gmra.mxu1 %v672_v29  ;;  %v498_v38 = vpop.f32.mrf.mxu0  ;;  %v511_v39 = vpop.f32.mrf.mxu1  ;;  %v3166_v26 = vld [vmem:[%s4037_s5 + $0x388] sm:$0xff]  ;;  %v3187_v32 = vld [vmem:[%s4037_s5 + $0x430] sm:$0xff] }
 0x25c   :  { %2123 = vmatpush.bf16.msrb.mxu0 %v3156_v20  ;;  %2136 = vmatpush.bf16.msrb.mxu1 %v3164_v21  ;;  %v3174_v27 = vld [vmem:[%s4037_s5 + $0x3c8] sm:$0xff]  ;;  %v3195_v33 = vld [vmem:[%s4037_s5 + $0x470] sm:$0xff]  ;;  %v3204_v38 = vld [vmem:[%s4037_s5 + $0x4b8] sm:$0xff] }
 0x25d   :  { %v653_v42 = vmax.f32 %v523_v36, 0.0  ;;  %v654_v43 = vmax.f32 %v536_v37, 0.0  ;;  %v3212_v39 = vld [vmem:[%s4037_s5 + $0x4f8] sm:$0xff] }
 0x25e   :  { %2104 = vmatpush.bf16.msra.mxu2 %v3133_v34  ;;  %2117 = vmatpush.bf16.msra.mxu3 %v3141_v35  ;;  %v3165_v34 = vld [vmem:[%s4037_s5 + $0x380] sm:$0xff] }
 0x25f   :  { %v673_v46 = vpack.c.bf16 %v653_v42, %v653_v42  ;;  %v674_v47 = vpack.c.bf16 %v654_v43, %v654_v43  ;;  %v3173_v35 = vld [vmem:[%s4037_s5 + $0x3c0] sm:$0xff] }
 0x260   :  { %2124 = vmatpush.bf16.msrb.mxu0 %v3155_v30  ;;  %2137 = vmatpush.bf16.msrb.mxu1 %v3163_v31 }
 0x261   :  { %2105 = vmatmul.bf16.vlgmr.msra.gmra.mxu2 %v673_v46  ;;  %2118 = vmatmul.bf16.vlgmr.msra.gmra.mxu3 %v674_v47 }
 0x262   :  { %2149 = vmatpush.bf16.msrb.mxu2 %v3172_v40  ;;  %2162 = vmatpush.bf16.msrb.mxu3 %v3180_v41  ;;  %v524_v52 = vpop.f32.mrf.mxu2  ;;  %v537_v53 = vpop.f32.mrf.mxu3 }
 0x263   :  { %v548_v54 = vpop.f32.mrf.mxu0  ;;  %v561_v55 = vpop.f32.mrf.mxu1  ;;  %v3202_v52 = vld [vmem:[%s4037_s5 + $0x4a8] sm:$0xff] }
 0x264   :  { %2125 = vmatpush.bf16.msrb.mxu0 %v3154_v44  ;;  %2138 = vmatpush.bf16.msrb.mxu1 %v3162_v45  ;;  %v549_v11 = vadd.f32 %v548_v54, %v251_v0  ;;  %v562_v12 = vadd.f32 %v561_v55, %v252_v2  ;;  %v3186_v44 = vld [vmem:[%s4037_s5 + $0x428] sm:$0xff]  ;;  %v3200_v2 = vld [vmem:[%s4037_s5 + $0x498] sm:$0xff] }
 0x265   :  { %v3194_v45 = vld [vmem:[%s4037_s5 + $0x468] sm:$0xff] }
 0x266   :  { %2150 = vmatpush.bf16.msrb.mxu2 %v3171_v48  ;;  %2163 = vmatpush.bf16.msrb.mxu3 %v3179_v49  ;;  %v655_v19 = vmax.f32 %v549_v11, 0.0  ;;  %v656_v20 = vmax.f32 %v562_v12, 0.0  ;;  %v3203_v48 = vld [vmem:[%s4037_s5 + $0x4b0] sm:$0xff]  ;;  %v3210_v53 = vld [vmem:[%s4037_s5 + $0x4e8] sm:$0xff]  ;;  %v3181_v12 = vld [vmem:[%s4037_s5 + $0x400] sm:$0xff] }
 0x267   :  { %v3211_v49 = vld [vmem:[%s4037_s5 + $0x4f0] sm:$0xff] }
 0x268   :  { %2126 = vmatpush.bf16.msrb.mxu0 %v3153_v50  ;;  %2139 = vmatpush.bf16.msrb.mxu1 %v3161_v51  ;;  %v675_v30 = vpack.c.bf16 %v655_v19, %v655_v19  ;;  %v676_v31 = vpack.c.bf16 %v656_v20, %v656_v20  ;;  %v3185_v50 = vld [vmem:[%s4037_s5 + $0x420] sm:$0xff] }
 0x269   :  { %v3193_v51 = vld [vmem:[%s4037_s5 + $0x460] sm:$0xff] }
 0x26a   :  { %2151 = vmatpush.bf16.msrb.mxu2 %v3170_v56  ;;  %2164 = vmatpush.bf16.msrb.mxu3 %v3178_v57  ;;  %v574_v3 = vpop.f32.mrf.mxu2  ;;  %v587_v4 = vpop.f32.mrf.mxu3  ;;  %v3184_v56 = vld [vmem:[%s4037_s5 + $0x418] sm:$0xff] }
 0x26b   :  { %v550_v5 = vpop.f32.mrf.mxu0  ;;  %v563_v6 = vpop.f32.mrf.mxu1  ;;  %v575_v28 = vadd.f32 %v574_v3, %v253_v15  ;;  %v588_v29 = vadd.f32 %v587_v4, %v254_v16  ;;  %v3192_v57 = vld [vmem:[%s4037_s5 + $0x458] sm:$0xff]  ;;  %v3182_v4 = vld [vmem:[%s4037_s5 + $0x408] sm:$0xff] }
 0x26c   :  { %2127 = vmatpush.bf16.msrb.mxu0 %v3152_v58  ;;  %2140 = vmatpush.bf16.msrb.mxu1 %v3160_v59  ;;  %v3201_v58 = vld [vmem:[%s4037_s5 + $0x4a0] sm:$0xff]  ;;  %v3208_v3 = vld [vmem:[%s4037_s5 + $0x4d8] sm:$0xff]  ;;  %v3190_v5 = vld [vmem:[%s4037_s5 + $0x448] sm:$0xff] }
 0x26d   :  { %v657_v36 = vmax.f32 %v575_v28, 0.0  ;;  %v658_v37 = vmax.f32 %v588_v29, 0.0  ;;  %v3209_v59 = vld [vmem:[%s4037_s5 + $0x4e0] sm:$0xff]  ;;  %v3198_v16 = vld [vmem:[%s4037_s5 + $0x488] sm:$0xff] }
 0x26e   :  { %2152 = vmatpush.bf16.msrb.mxu2 %v3169_v60  ;;  %2165 = vmatpush.bf16.msrb.mxu3 %v3177_v61  ;;  %v235_v60 = vld [vmem:[%s4036_s4 + $0x10] sm:$0xf] }
 0x26f   :  { %v677_v46 = vpack.c.bf16 %v657_v36, %v657_v36  ;;  %v678_v47 = vpack.c.bf16 %v658_v37, %v658_v37  ;;  %v3183_v61 = vld [vmem:[%s4037_s5 + $0x410] sm:$0xff]  ;;  %v256_v0 = vperm.slane %v235_v60, 1  ;;  %v258_v11 = vperm.slane %v235_v60, 3 }
 0x270   :  { %2128 = vmatpush.bf16.msrb.mxu0 %v3151_v62  ;;  %2141 = vmatpush.bf16.msrb.mxu1 %v3159_v63  ;;  %v3191_v62 = vld [vmem:[%s4037_s5 + $0x450] sm:$0xff]  ;;  %v255_v63 = vperm.slane %v235_v60, 0 }
 0x272   :  { %2153 = vmatpush.bf16.msrb.mxu2 %v3168_v7  ;;  %2166 = vmatpush.bf16.msrb.mxu3 %v3176_v8  ;;  %v576_v21 = vpop.f32.mrf.mxu2  ;;  %v589_v22 = vpop.f32.mrf.mxu3  ;;  %v3199_v8 = vld [vmem:[%s4037_s5 + $0x490] sm:$0xff] }
 0x273   :  { %v3909_v24 = vpop.f32.mrf.mxu0  ;;  %v3911_v25 = vpop.f32.mrf.mxu1  ;;  %v3197_v22 = vld [vmem:[%s4037_s5 + $0x480] sm:$0xff] }
 0x274   :  { %2129 = vmatpush.bf16.msrb.mxu0 %v3150_v9  ;;  %2142 = vmatpush.bf16.msrb.mxu1 %v3158_v10  ;;  %v601_v6 = vadd.f32 %v3909_v24, %v255_v63  ;;  %v614_v7 = vadd.f32 %v3911_v25, %v256_v0  ;;  %v3207_v9 = vld [vmem:[%s4037_s5 + $0x4d0] sm:$0xff]  ;;  %v257_v10 = vperm.slane %v235_v60, 2 }
 0x276   :  { %2154 = vmatpush.bf16.msrb.mxu2 %v3167_v13  ;;  %2167 = vmatpush.bf16.msrb.mxu3 %v3175_v14  ;;  %v3189_v13 = vld [vmem:[%s4037_s5 + $0x440] sm:$0xff]  ;;  %v659_v14 = vmax.f32 %v601_v6, 0.0  ;;  %v660_v15 = vmax.f32 %v614_v7, 0.0 }
 0x278   :  { %2130 = vmatpush.bf16.msrb.mxu0 %v3149_v17  ;;  %2143 = vmatpush.bf16.msrb.mxu1 %v3157_v18  ;;  %v3206_v17 = vld [vmem:[%s4037_s5 + $0x4c8] sm:$0xff]  ;;  %v679_v20 = vpack.c.bf16 %v659_v14, %v659_v14  ;;  %v680_v21 = vpack.c.bf16 %v660_v15, %v660_v15 }
 0x27a   :  { %2155 = vmatpush.bf16.msrb.mxu2 %v3166_v26  ;;  %2168 = vmatpush.bf16.msrb.mxu3 %v3174_v27  ;;  %v3937_v40 = vpop.f32.mrf.mxu2  ;;  %v3939_v41 = vpop.f32.mrf.mxu3  ;;  %v3217_v27 = vld [vmem:[%s4038_s6] ss:$0 sm:$0xff] }
 0x27b   :  { %2131 = vmatmul.bf16.vlgmr.msrb.gmra.mxu0 %v675_v30  ;;  %2144 = vmatmul.bf16.vlgmr.msrb.gmra.mxu1 %v676_v31  ;;  %v602_v42 = vpop.f32.mrf.mxu0  ;;  %v615_v43 = vpop.f32.mrf.mxu1  ;;  %v627_v18 = vadd.f32 %v3937_v40, %v257_v10  ;;  %v640_v19 = vadd.f32 %v3939_v41, %v258_v11 }
 0x27c   :  { %2175 = vmatpush.bf16.msra.mxu0 %v3188_v23  ;;  %2188 = vmatpush.bf16.msra.mxu1 %v3196_v1  ;;  %v3205_v23 = vld [vmem:[%s4037_s5 + $0x4c0] sm:$0xff]  ;;  %s3245_s5 = smov [#allocation2]  }
 0x27d   :  { %v661_v1 = vmax.f32 %v627_v18, 0.0  ;;  %v662_v24 = vmax.f32 %v640_v19, 0.0  ;;  %s2233_s6 = sshll.u32 %s3245_s5, 4  ;;  %s2234_s6 = int_to_ptr.vmem [resolvable:$true] %s2233_s6 }
 0x27e   :  { %2156 = vmatpush.bf16.msrb.mxu2 %v3165_v34  ;;  %2169 = vmatpush.bf16.msrb.mxu3 %v3173_v35 }
 0x27f   :  { %v681_v25 = vpack.c.bf16 %v661_v1, %v661_v1  ;;  %v682_v26 = vpack.c.bf16 %v662_v24, %v662_v24 }
 0x280   :  { %2176 = vmatpush.bf16.msra.mxu0 %v3187_v32  ;;  %2189 = vmatpush.bf16.msra.mxu1 %v3195_v33 }
 0x281   :  { %2157 = vmatmul.bf16.vlgmr.msrb.gmra.mxu2 %v677_v46  ;;  %2170 = vmatmul.bf16.vlgmr.msrb.gmra.mxu3 %v678_v47 }
 0x282   :  { %2201 = vmatpush.bf16.msra.mxu2 %v3204_v38  ;;  %2214 = vmatpush.bf16.msra.mxu3 %v3212_v39  ;;  %v628_v54 = vpop.f32.mrf.mxu2  ;;  %v641_v55 = vpop.f32.mrf.mxu3 }
 0x284   :  { %2177 = vmatpush.bf16.msra.mxu0 %v3186_v44  ;;  %2190 = vmatpush.bf16.msra.mxu1 %v3194_v45 }
 0x286   :  { %2202 = vmatpush.bf16.msra.mxu2 %v3203_v48  ;;  %2215 = vmatpush.bf16.msra.mxu3 %v3211_v49 }
 0x288   :  { %2178 = vmatpush.bf16.msra.mxu0 %v3185_v50  ;;  %2191 = vmatpush.bf16.msra.mxu1 %v3193_v51 }
 0x28a   :  { %2203 = vmatpush.bf16.msra.mxu2 %v3202_v52  ;;  %2216 = vmatpush.bf16.msra.mxu3 %v3210_v53 }
 0x28c   :  { %2179 = vmatpush.bf16.msra.mxu0 %v3184_v56  ;;  %2192 = vmatpush.bf16.msra.mxu1 %v3192_v57 }
 0x28e   :  { %2204 = vmatpush.bf16.msra.mxu2 %v3201_v58  ;;  %2217 = vmatpush.bf16.msra.mxu3 %v3209_v59 }
 0x290   :  { %2180 = vmatpush.bf16.msra.mxu0 %v3183_v61  ;;  %2193 = vmatpush.bf16.msra.mxu1 %v3191_v62 }
 0x292   :  { %2205 = vmatpush.bf16.msra.mxu2 %v3200_v2  ;;  %2218 = vmatpush.bf16.msra.mxu3 %v3208_v3 }
 0x294   :  { %2181 = vmatpush.bf16.msra.mxu0 %v3182_v4  ;;  %2194 = vmatpush.bf16.msra.mxu1 %v3190_v5 }
 0x296   :  { %2206 = vmatpush.bf16.msra.mxu2 %v3199_v8  ;;  %2219 = vmatpush.bf16.msra.mxu3 %v3207_v9 }
 0x298   :  { %2182 = vmatpush.bf16.msra.mxu0 %v3181_v12  ;;  %2195 = vmatpush.bf16.msra.mxu1 %v3189_v13 }
 0x29a   :  { %2207 = vmatpush.bf16.msra.mxu2 %v3198_v16  ;;  %2220 = vmatpush.bf16.msra.mxu3 %v3206_v17 }
 0x29b   :  { %2183 = vmatmul.bf16.vlgmr.msra.gmra.mxu0 %v679_v20  ;;  %2196 = vmatmul.bf16.vlgmr.msra.gmra.mxu1 %v680_v21 }
 0x29e   :  { %2208 = vmatpush.bf16.msra.mxu2 %v3197_v22  ;;  %2221 = vmatpush.bf16.msra.mxu3 %v3205_v23 }
 0x2a1   :  { %2209 = vmatmul.bf16.vlgmr.msra.gmra.mxu2 %v681_v25  ;;  %2222 = vmatmul.bf16.vlgmr.msra.gmra.mxu3 %v682_v26 }
 0x2b7   :  { %v1976_v28 = vpop.f32.mrf.mxu0  ;;  %v1989_v29 = vpop.f32.mrf.mxu1 }
 0x2b8   :  { %v1977_v30 = vadd.f32 %v3217_v27, %v1976_v28 }
 0x2ba   :  { %v1990_v31 = vadd.f32 %v1989_v29, %v1977_v30 }
 0x2bf   :  { %v1978_v32 = vpop.f32.mrf.mxu0  ;;  %v1991_v33 = vpop.f32.mrf.mxu1 }
 0x2c4   :  { %v2002_v34 = vpop.f32.mrf.mxu2  ;;  %v2015_v35 = vpop.f32.mrf.mxu3 }
 0x2c5   :  { %v2003_v52 = vadd.f32 %v2002_v34, %v1990_v31 }
 0x2c7   :  { %v2016_v55 = vadd.f32 %v2015_v35, %v2003_v52 }
 0x2c8   :  { %v2028_v36 = vpop.f32.mrf.mxu0  ;;  %v2041_v37 = vpop.f32.mrf.mxu1 }
 0x2c9   :  { %v2029_v56 = vadd.f32 %v2028_v36, %v2016_v55 }
 0x2cb   :  { %v2042_v59 = vadd.f32 %v2041_v37, %v2029_v56 }
 0x2cc   :  { %v2004_v38 = vpop.f32.mrf.mxu2  ;;  %v2017_v39 = vpop.f32.mrf.mxu3 }
 0x2d0   :  { %v2030_v40 = vpop.f32.mrf.mxu0  ;;  %v2043_v41 = vpop.f32.mrf.mxu1 }
 0x2d4   :  { %v2054_v42 = vpop.f32.mrf.mxu2  ;;  %v2067_v43 = vpop.f32.mrf.mxu3 }
 0x2d5   :  { %v2055_v60 = vadd.f32 %v2054_v42, %v2042_v59 }
 0x2d7   :  { %v2068_v61 = vadd.f32 %v2067_v43, %v2055_v60 }
 0x2d8   :  { %v2080_v44 = vpop.f32.mrf.mxu0  ;;  %v2093_v45 = vpop.f32.mrf.mxu1 }
 0x2d9   :  { %v2081_v0 = vadd.f32 %v2080_v44, %v2068_v61 }
 0x2db   :  { %v2094_v4 = vadd.f32 %v2093_v45, %v2081_v0 }
 0x2dc   :  { %v2056_v46 = vpop.f32.mrf.mxu2  ;;  %v2069_v47 = vpop.f32.mrf.mxu3 }
 0x2e0   :  { %v2082_v48 = vpop.f32.mrf.mxu0  ;;  %v2095_v49 = vpop.f32.mrf.mxu1 }
 0x2e4   :  { %v2106_v50 = vpop.f32.mrf.mxu2  ;;  %v2119_v51 = vpop.f32.mrf.mxu3 }
 0x2e5   :  { %v2107_v5 = vadd.f32 %v2106_v50, %v2094_v4 }
 0x2e7   :  { %v2120_v8 = vadd.f32 %v2119_v51, %v2107_v5 }
 0x2ec   :  { %v2108_v53 = vpop.f32.mrf.mxu2  ;;  %v2121_v54 = vpop.f32.mrf.mxu3 }
 0x2f8   :  { %v2132_v57 = vpop.f32.mrf.mxu0  ;;  %v2145_v58 = vpop.f32.mrf.mxu1 }
 0x2f9   :  { %v2133_v9 = vadd.f32 %v2132_v57, %v2120_v8 }
 0x2fb   :  { %v2146_v10 = vadd.f32 %v2145_v58, %v2133_v9 }
 0x300   :  { %v2134_v62 = vpop.f32.mrf.mxu0  ;;  %v2147_v63 = vpop.f32.mrf.mxu1 }
 0x304   :  { %v2158_v2 = vpop.f32.mrf.mxu2  ;;  %v2171_v3 = vpop.f32.mrf.mxu3 }
 0x305   :  { %v2159_v11 = vadd.f32 %v2158_v2, %v2146_v10 }
 0x307   :  { %v2172_v14 = vadd.f32 %v2171_v3, %v2159_v11 }
 0x30c   :  { %v2160_v6 = vpop.f32.mrf.mxu2  ;;  %v2173_v7 = vpop.f32.mrf.mxu3 }
 0x318   :  { %v2184_v12 = vpop.f32.mrf.mxu0  ;;  %v2197_v13 = vpop.f32.mrf.mxu1 }
 0x319   :  { %v2185_v15 = vadd.f32 %v2184_v12, %v2172_v14 }
 0x31b   :  { %v2198_v18 = vadd.f32 %v2197_v13, %v2185_v15 }
 0x320   :  { %v2186_v16 = vpop.f32.mrf.mxu0  ;;  %v2199_v17 = vpop.f32.mrf.mxu1 }
 0x324   :  { %v2210_v19 = vpop.f32.mrf.mxu2  ;;  %v2223_v20 = vpop.f32.mrf.mxu3 }
 0x325   :  { %v2211_v21 = vadd.f32 %v2210_v19, %v2198_v18 }
 0x327   :  { %v2224_v22 = vadd.f32 %v2223_v20, %v2211_v21 }
 0x329   :  { %2227 = vst [vmem:[#allocation2] sm:$0x3] %v2224_v22 }
 0x32a   :  { %2238 = dma.vmem_to_hbm [thread:$0]  %s2234_s6, 32, %s2236_s19, [#allocation3]  }
 0x32c   :  { %v2212_v23 = vpop.f32.mrf.mxu2  ;;  %v2225_v1 = vpop.f32.mrf.mxu3 }
 0x32d   :  { %3242 = dma.done.wait [#allocation3], 32  }
 0x32e   :  { %3243 = vsyncadd [#allocation3], 4294967264 }
 0x32f   :  { %2243 = vsyncpa [#allocation3], 1 }

</bundles_post_ra>
